<compile_context>
chip_gen: v7x
topology: tpu7x:2x2x1
jax: 0.10.0
libtpu: 0.0.40
codegen_flags: <defaults>
</compile_context>

<pallas_src>
import jax
import jax.numpy as jnp
from jax import lax
from jax.experimental import pallas as pl
from jax.experimental.pallas import tpu as pltpu

LANE = 128
SUBLANE = 8


def _round_up(v, m):
    return ((v + m - 1) // m) * m


# ---------------------------------------------------------------------------
# Pallas kernels
# ---------------------------------------------------------------------------
def _make_mlp_kernel(n_layers):
    """Fused Linear+Tanh stack: all layers in one kernel, VMEM-resident."""
    def kernel(x_ref, *rest):
        param_refs, o_ref = rest[:-1], rest[-1]
        a = x_ref[...]
        for l in range(n_layers):
            w = param_refs[2 * l][...]
            b = param_refs[2 * l + 1][...]
            a = jnp.tanh(jnp.dot(a, w, preferred_element_type=jnp.float32) + b)
        o_ref[...] = a
    return kernel


def _make_branches_dot_kernel(n1, n2):
    """Fused: branch1 MLP + branch2 MLP + elementwise mul + contraction.

    Grid is (M tiles, N tiles); the branch product only depends on the M tile,
    so it is computed at the first N step and cached in VMEM scratch.
    """
    def kernel(f_ref, fbc_ref, ytr_ref, *rest):
        param_refs, o_ref, ybr_ref = rest[:-2], rest[-2], rest[-1]
        p1 = param_refs[:2 * n1]
        p2 = param_refs[2 * n1:]

        @pl.when(pl.program_id(1) == 0)
        def _compute_branches():
            a = f_ref[...]
            for l in range(n1):
                w = p1[2 * l][...]
                b = p1[2 * l + 1][...]
                a = jnp.tanh(jnp.dot(a, w, preferred_element_type=jnp.float32) + b)
            c = fbc_ref[...]
            for l in range(n2):
                w = p2[2 * l][...]
                b = p2[2 * l + 1][...]
                c = jnp.tanh(jnp.dot(c, w, preferred_element_type=jnp.float32) + b)
            ybr_ref[...] = a * c

        # einsum('ij,kj->ik'): contract last axes of both operands directly on
        # the MXU -- no in-kernel .T / XLU relayout of the trunk tile.
        o_ref[...] = lax.dot_general(
            ybr_ref[...], ytr_ref[...],
            dimension_numbers=(((1,), (1,)), ((), ())),
            preferred_element_type=jnp.float32)
    return kernel


# ---------------------------------------------------------------------------
# Wrappers
# ---------------------------------------------------------------------------
def _pad_params(params):
    """Zero-pad weights/biases so every hidden (lane) dim is a 128 multiple."""
    padded = []
    for idx, (w, b) in enumerate(params):
        din, dout = w.shape
        din_p = din if idx == 0 else _round_up(din, LANE)
        dout_p = _round_up(dout, LANE)
        wp = jnp.zeros((din_p, dout_p), jnp.float32).at[:din, :dout].set(w)
        bp = jnp.zeros((1, dout_p), jnp.float32).at[:, :dout].set(b)
        padded.append((wp, bp))
    return padded


def _trunk_mlp(x_p, params_p, tile_rows):
    N_pad, dx = x_p.shape
    H_pad = params_p[-1][0].shape[1]
    n_layers = len(params_p)

    in_specs = [pl.BlockSpec((tile_rows, dx), lambda i: (i, 0))]
    flat = [x_p]
    for w, b in params_p:
        in_specs.append(pl.BlockSpec(w.shape, lambda i: (0, 0)))   # resident
        in_specs.append(pl.BlockSpec(b.shape, lambda i: (0, 0)))
        flat += [w, b]

    return pl.pallas_call(
        _make_mlp_kernel(n_layers),
        out_shape=jax.ShapeDtypeStruct((N_pad, H_pad), jnp.float32),
        grid_spec=pltpu.PrefetchScalarGridSpec(
            num_scalar_prefetch=0,
            grid=(N_pad // tile_rows,),
            in_specs=in_specs,
            out_specs=pl.BlockSpec((tile_rows, H_pad), lambda i: (i, 0))),
        compiler_params=pltpu.CompilerParams(
            dimension_semantics=("parallel",)),
    )(*flat)


def _branches_and_contract(f_p, fbc_p, y_tr_p, br1_p, br2_p, tm, tnb):
    M_pad, dim_f = f_p.shape
    _, dim_fbc = fbc_p.shape
    N_pad, H_pad = y_tr_p.shape
    n1, n2 = len(br1_p), len(br2_p)
    all_params = list(br1_p) + list(br2_p)

    in_specs = [
        pl.BlockSpec((tm, dim_f), lambda i, j: (i, 0)),
        pl.BlockSpec((tm, dim_fbc), lambda i, j: (i, 0)),
        pl.BlockSpec((tnb, H_pad), lambda i, j: (j, 0)),
    ]
    flat = [f_p, fbc_p, y_tr_p]
    for w, b in all_params:
        in_specs.append(pl.BlockSpec(w.shape, lambda i, j: (0, 0)))  # resident
        in_specs.append(pl.BlockSpec(b.shape, lambda i, j: (0, 0)))
        flat += [w, b]

    br_flops = 2 * M_pad * sum(w.shape[0] * w.shape[1] for w, _ in all_params)
    flops = int(2 * M_pad * N_pad * H_pad + br_flops)
    transc = int(M_pad * sum(w.shape[1] for w, _ in all_params))
    bytes_acc = int(4 * (f_p.size + fbc_p.size + y_tr_p.size + M_pad * N_pad
                         + sum(w.size + b.size for w, b in all_params)))

    return pl.pallas_call(
        _make_branches_dot_kernel(n1, n2),
        out_shape=jax.ShapeDtypeStruct((M_pad, N_pad), jnp.float32),
        grid_spec=pltpu.PrefetchScalarGridSpec(
            num_scalar_prefetch=0,
            grid=(M_pad // tm, N_pad // tnb),
            in_specs=in_specs,
            out_specs=pl.BlockSpec((tm, tnb), lambda i, j: (i, j)),
            scratch_shapes=[pltpu.VMEM((tm, H_pad), jnp.float32)]),
        compiler_params=pltpu.CompilerParams(
            dimension_semantics=("parallel", "arbitrary")),
        cost_estimate=pl.CostEstimate(
            flops=flops, transcendentals=transc, bytes_accessed=bytes_acc),
    )(*flat)


@jax.jit
def opnn_forward(f, f_bc, x, br1_params, br2_params, trunk_params):
    M, _ = f.shape
    N, dim_x = x.shape

    br1_p = _pad_params(br1_params)
    br2_p = _pad_params(br2_params)
    tr_p = _pad_params(trunk_params)

    # Tile sizes: M-tile sublane-aligned (<=256), N-tile lane-aligned (<=512).
    tm = min(256, _round_up(M, SUBLANE))
    M_pad = _round_up(M, tm)
    tnb = min(512, _round_up(N, LANE))
    N_pad = _round_up(N, tnb)

    f_p = jnp.zeros((M_pad, f.shape[1]), jnp.float32).at[:M].set(f)
    fbc_p = jnp.zeros((M_pad, f_bc.shape[1]), jnp.float32).at[:M].set(f_bc)
    x_p = jnp.zeros((N_pad, dim_x), jnp.float32).at[:N].set(x)

    y_tr_p = _trunk_mlp(x_p, tr_p, tnb)                       # [N_pad, H_pad]
    y_full = _branches_and_contract(f_p, fbc_p, y_tr_p, br1_p, br2_p, tm, tnb)
    return y_full[:M, :N]


def opnn_loss(f, f_bc, x, y, br1_params, br2_params, trunk_params):
    y_out = opnn_forward(f, f_bc, x, br1_params, br2_params, trunk_params)
    return jnp.mean((y_out - y) ** 2)


# ---------------------------------------------------------------------------
# Parameter init (deterministic, PyTorch-nn.Linear-like uniform(+-1/sqrt(in)))
# ---------------------------------------------------------------------------
def init_mlp_params(key, dims):
    """dims = [d0, d1, ..., dL] -> list of (W[din,dout], b[1,dout])."""
    params = []
    for i in range(1, len(dims)):
        din, dout = dims[i - 1], dims[i]
        key, kw, kb = jax.random.split(key, 3)
        bound = 1.0 / jnp.sqrt(float(din))
        w = jax.random.uniform(kw, (din, dout), jnp.float32, -bound, bound)
        b = jax.random.uniform(kb, (1, dout), jnp.float32, -bound, bound)
        params.append((w, b))
    return params, key


# ---------------------------------------------------------------------------
# Pure-JAX reference for sanity check
# ---------------------------------------------------------------------------
def _ref_mlp(x, params):
    for w, b in params:
        x = jnp.tanh(x @ w + b)
    return x


def _ref_forward(f, f_bc, x, p1, p2, pt):
    y_br = _ref_mlp(f, p1) * _ref_mlp(f_bc, p2)
    y_tr = _ref_mlp(x, pt)
    return jnp.einsum('ij,kj->ik', y_br, y_tr)


if __name__ == "__main__":
    # Small, module-consistent shapes.
    M, N = 8, 8
    dim_f, dim_fbc, dim_x, hidden = 16, 16, 2, 32
    branch1_dim = [dim_f, hidden, hidden]
    branch2_dim = [dim_fbc, hidden, hidden]
    trunk_dim = [dim_x, hidden, hidden]   # z_dim = trunk_dim[-1] = 32

    key = jax.random.PRNGKey(0)
    br1_params, key = init_mlp_params(key, branch1_dim)
    br2_params, key = init_mlp_params(key, branch2_dim)
    trunk_params, key = init_mlp_params(key, trunk_dim)

    key, kf, kfb, kx = jax.random.split(key, 4)
    f = jax.random.normal(kf, (M, dim_f), jnp.float32)
    f_bc = jax.random.normal(kfb, (M, dim_fbc), jnp.float32)
    x = jax.random.normal(kx, (N, dim_x), jnp.float32)

    y_out = opnn_forward(f, f_bc, x, br1_params, br2_params, trunk_params)
    y_out = jax.block_until_ready(y_out)

    y_ref = _ref_forward(f, f_bc, x, br1_params, br2_params, trunk_params)
    assert y_out.shape == (M, N)
    assert jnp.allclose(y_out, y_ref, atol=1e-5, rtol=1e-5), "mismatch vs reference"

    print("KERNEL_OK")
</pallas_src>

<mosaic_0001>
module attributes {stable_mosaic.version = 11 : i64} {
  func.func @kernel(%arg0: i32, %arg1: memref<128x2xf32, #tpu.memory_space<vmem>>, %arg2: memref<2x128xf32, #tpu.memory_space<vmem>>, %arg3: memref<1x128xf32, #tpu.memory_space<vmem>>, %arg4: memref<128x128xf32, #tpu.memory_space<vmem>>, %arg5: memref<1x128xf32, #tpu.memory_space<vmem>>, %arg6: memref<128x128xf32, #tpu.memory_space<vmem>>) attributes {dimension_semantics = [#tpu.dimension_semantics<parallel>], iteration_bounds = array<i64: 1>, scalar_prefetch = 0 : i64, scratch_operands = 0 : i64, tpu.core_type = #tpu.core_type<tc>, window_params = [{transform_indices = @transform_0, window_bounds = array<i64: 128, 2>}, {pipeline_mode = #tpu.pipeline_mode<synchronous>, transform_indices = @transform_1, window_bounds = array<i64: 2, 128>}, {pipeline_mode = #tpu.pipeline_mode<synchronous>, transform_indices = @transform_2, window_bounds = array<i64: 1, 128>}, {pipeline_mode = #tpu.pipeline_mode<synchronous>, transform_indices = @transform_3, window_bounds = array<i64: 128, 128>}, {pipeline_mode = #tpu.pipeline_mode<synchronous>, transform_indices = @transform_4, window_bounds = array<i64: 1, 128>}, {transform_indices = @transform_5, window_bounds = array<i64: 128, 128>}]} {
    %c0 = arith.constant 0 : index
    %c0_0 = arith.constant 0 : index
    %0 = vector.load %arg1[%c0, %c0_0] : memref<128x2xf32, #tpu.memory_space<vmem>>, vector<128x2xf32>
    %c0_1 = arith.constant 0 : index
    %c0_2 = arith.constant 0 : index
    %1 = vector.load %arg2[%c0_1, %c0_2] : memref<2x128xf32, #tpu.memory_space<vmem>>, vector<2x128xf32>
    %c0_3 = arith.constant 0 : index
    %c0_4 = arith.constant 0 : index
    %2 = vector.load %arg3[%c0_3, %c0_4] : memref<1x128xf32, #tpu.memory_space<vmem>>, vector<1x128xf32>
    %cst = arith.constant dense<0.000000e+00> : vector<128x128xf32>
    %3 = tpu.matmul %0, %1, %cst {dimension_numbers = #tpu.dot_dimension_numbers<[1], [0], [0], [1], [0, 0, 1, 1], [], []>} : vector<128x2xf32>, vector<2x128xf32>, vector<128x128xf32> -> vector<128x128xf32>
    %4 = vector.broadcast %2 : vector<1x128xf32> to vector<128x128xf32>
    %5 = arith.addf %3, %4 : vector<128x128xf32>
    %6 = math.tanh %5 : vector<128x128xf32>
    %c0_5 = arith.constant 0 : index
    %c0_6 = arith.constant 0 : index
    %7 = vector.load %arg4[%c0_5, %c0_6] : memref<128x128xf32, #tpu.memory_space<vmem>>, vector<128x128xf32>
    %c0_7 = arith.constant 0 : index
    %c0_8 = arith.constant 0 : index
    %8 = vector.load %arg5[%c0_7, %c0_8] : memref<1x128xf32, #tpu.memory_space<vmem>>, vector<1x128xf32>
    %cst_9 = arith.constant dense<0.000000e+00> : vector<128x128xf32>
    %9 = tpu.matmul %6, %7, %cst_9 {dimension_numbers = #tpu.dot_dimension_numbers<[1], [0], [0], [1], [0, 0, 1, 1], [], []>} : vector<128x128xf32>, vector<128x128xf32>, vector<128x128xf32> -> vector<128x128xf32>
    %10 = vector.broadcast %8 : vector<1x128xf32> to vector<128x128xf32>
    %11 = arith.addf %9, %10 : vector<128x128xf32>
    %12 = math.tanh %11 : vector<128x128xf32>
    %c0_10 = arith.constant 0 : index
    %c0_11 = arith.constant 0 : index
    %13 = vector.load %arg6[%c0_10, %c0_11] : memref<128x128xf32, #tpu.memory_space<vmem>>, vector<128x128xf32>
    tpu.vector_store %arg6[%c0_10, %c0_11], %12 {strides = array<i32>} : memref<128x128xf32, #tpu.memory_space<vmem>>, vector<128x128xf32>,
    return
  }
  func.func @transform_0(%arg0: i32) -> (i32, i32) {
    %c0_i32 = arith.constant 0 : i32
    %c0_i32_0 = arith.constant 0 : i32
    return %arg0, %c0_i32 : i32, i32
  }
  func.func @transform_1(%arg0: i32) -> (i32, i32) {
    %c0_i32 = arith.constant 0 : i32
    %c0_i32_0 = arith.constant 0 : i32
    %c0_i32_1 = arith.constant 0 : i32
    return %c0_i32, %c0_i32_0 : i32, i32
  }
  func.func @transform_2(%arg0: i32) -> (i32, i32) {
    %c0_i32 = arith.constant 0 : i32
    %c0_i32_0 = arith.constant 0 : i32
    %c0_i32_1 = arith.constant 0 : i32
    return %c0_i32, %c0_i32_0 : i32, i32
  }
  func.func @transform_3(%arg0: i32) -> (i32, i32) {
    %c0_i32 = arith.constant 0 : i32
    %c0_i32_0 = arith.constant 0 : i32
    %c0_i32_1 = arith.constant 0 : i32
    return %c0_i32, %c0_i32_0 : i32, i32
  }
  func.func @transform_4(%arg0: i32) -> (i32, i32) {
    %c0_i32 = arith.constant 0 : i32
    %c0_i32_0 = arith.constant 0 : i32
    %c0_i32_1 = arith.constant 0 : i32
    return %c0_i32, %c0_i32_0 : i32, i32
  }
  func.func @transform_5(%arg0: i32) -> (i32, i32) {
    %c0_i32 = arith.constant 0 : i32
    %c0_i32_0 = arith.constant 0 : i32
    return %arg0, %c0_i32 : i32, i32
  }
}

module attributes {stable_mosaic.version = 11 : i64} {
  func.func @kernel(%arg0: i32, %arg1: i32, %arg2: memref<8x16xf32, #tpu.memory_space<vmem>>, %arg3: memref<8x16xf32, #tpu.memory_space<vmem>>, %arg4: memref<128x128xf32, #tpu.memory_space<vmem>>, %arg5: memref<16x128xf32, #tpu.memory_space<vmem>>, %arg6: memref<1x128xf32, #tpu.memory_space<vmem>>, %arg7: memref<128x128xf32, #tpu.memory_space<vmem>>, %arg8: memref<1x128xf32, #tpu.memory_space<vmem>>, %arg9: memref<16x128xf32, #tpu.memory_space<vmem>>, %arg10: memref<1x128xf32, #tpu.memory_space<vmem>>, %arg11: memref<128x128xf32, #tpu.memory_space<vmem>>, %arg12: memref<1x128xf32, #tpu.memory_space<vmem>>, %arg13: memref<8x128xf32, #tpu.memory_space<vmem>>, %arg14: memref<8x128xf32, #tpu.memory_space<vmem>>) attributes {dimension_semantics = [#tpu.dimension_semantics<parallel>, #tpu.dimension_semantics<arbitrary>], iteration_bounds = array<i64: 1, 1>, scalar_prefetch = 0 : i64, scratch_operands = 1 : i64, tpu.core_type = #tpu.core_type<tc>, window_params = [{transform_indices = @transform_0, window_bounds = array<i64: 8, 16>}, {transform_indices = @transform_1, window_bounds = array<i64: 8, 16>}, {transform_indices = @transform_2, window_bounds = array<i64: 128, 128>}, {pipeline_mode = #tpu.pipeline_mode<synchronous>, transform_indices = @transform_3, window_bounds = array<i64: 16, 128>}, {pipeline_mode = #tpu.pipeline_mode<synchronous>, transform_indices = @transform_4, window_bounds = array<i64: 1, 128>}, {pipeline_mode = #tpu.pipeline_mode<synchronous>, transform_indices = @transform_5, window_bounds = array<i64: 128, 128>}, {pipeline_mode = #tpu.pipeline_mode<synchronous>, transform_indices = @transform_6, window_bounds = array<i64: 1, 128>}, {pipeline_mode = #tpu.pipeline_mode<synchronous>, transform_indices = @transform_7, window_bounds = array<i64: 16, 128>}, {pipeline_mode = #tpu.pipeline_mode<synchronous>, transform_indices = @transform_8, window_bounds = array<i64: 1, 128>}, {pipeline_mode = #tpu.pipeline_mode<synchronous>, transform_indices = @transform_9, window_bounds = array<i64: 128, 128>}, {pipeline_mode = #tpu.pipeline_mode<synchronous>, transform_indices = @transform_10, window_bounds = array<i64: 1, 128>}, {transform_indices = @transform_11, window_bounds = array<i64: 8, 128>}]} {
    %c0_i32 = arith.constant 0 : i32
    %0 = arith.cmpi eq, %arg1, %c0_i32 : i32
    %1 = arith.extui %0 : i1 to i32
    %c0_i32_0 = arith.constant 0 : i32
    %2 = arith.cmpi ne, %1, %c0_i32_0 : i32
    scf.if %2 {
      %c0_6 = arith.constant 0 : index
      %c0_7 = arith.constant 0 : index
      %7 = vector.load %arg2[%c0_6, %c0_7] : memref<8x16xf32, #tpu.memory_space<vmem>>, vector<8x16xf32>
      %c0_8 = arith.constant 0 : index
      %c0_9 = arith.constant 0 : index
      %8 = vector.load %arg5[%c0_8, %c0_9] : memref<16x128xf32, #tpu.memory_space<vmem>>, vector<16x128xf32>
      %c0_10 = arith.constant 0 : index
      %c0_11 = arith.constant 0 : index
      %9 = vector.load %arg6[%c0_10, %c0_11] : memref<1x128xf32, #tpu.memory_space<vmem>>, vector<1x128xf32>
      %cst_12 = arith.constant dense<0.000000e+00> : vector<8x128xf32>
      %10 = tpu.matmul %7, %8, %cst_12 {dimension_numbers = #tpu.dot_dimension_numbers<[1], [0], [0], [1], [0, 0, 1, 1], [], []>} : vector<8x16xf32>, vector<16x128xf32>, vector<8x128xf32> -> vector<8x128xf32>
      %11 = vector.broadcast %9 : vector<1x128xf32> to vector<8x128xf32>
      %12 = arith.addf %10, %11 : vector<8x128xf32>
      %13 = math.tanh %12 : vector<8x128xf32>
      %c0_13 = arith.constant 0 : index
      %c0_14 = arith.constant 0 : index
      %14 = vector.load %arg7[%c0_13, %c0_14] : memref<128x128xf32, #tpu.memory_space<vmem>>, vector<128x128xf32>
      %c0_15 = arith.constant 0 : index
      %c0_16 = arith.constant 0 : index
      %15 = vector.load %arg8[%c0_15, %c0_16] : memref<1x128xf32, #tpu.memory_space<vmem>>, vector<1x128xf32>
      %cst_17 = arith.constant dense<0.000000e+00> : vector<8x128xf32>
      %16 = tpu.matmul %13, %14, %cst_17 {dimension_numbers = #tpu.dot_dimension_numbers<[1], [0], [0], [1], [0, 0, 1, 1], [], []>} : vector<8x128xf32>, vector<128x128xf32>, vector<8x128xf32> -> vector<8x128xf32>
      %17 = vector.broadcast %15 : vector<1x128xf32> to vector<8x128xf32>
      %18 = arith.addf %16, %17 : vector<8x128xf32>
      %19 = math.tanh %18 : vector<8x128xf32>
      %c0_18 = arith.constant 0 : index
      %c0_19 = arith.constant 0 : index
      %20 = vector.load %arg3[%c0_18, %c0_19] : memref<8x16xf32, #tpu.memory_space<vmem>>, vector<8x16xf32>
      %c0_20 = arith.constant 0 : index
      %c0_21 = arith.constant 0 : index
      %21 = vector.load %arg9[%c0_20, %c0_21] : memref<16x128xf32, #tpu.memory_space<vmem>>, vector<16x128xf32>
      %c0_22 = arith.constant 0 : index
      %c0_23 = arith.constant 0 : index
      %22 = vector.load %arg10[%c0_22, %c0_23] : memref<1x128xf32, #tpu.memory_space<vmem>>, vector<1x128xf32>
      %cst_24 = arith.constant dense<0.000000e+00> : vector<8x128xf32>
      %23 = tpu.matmul %20, %21, %cst_24 {dimension_numbers = #tpu.dot_dimension_numbers<[1], [0], [0], [1], [0, 0, 1, 1], [], []>} : vector<8x16xf32>, vector<16x128xf32>, vector<8x128xf32> -> vector<8x128xf32>
      %24 = vector.broadcast %22 : vector<1x128xf32> to vector<8x128xf32>
      %25 = arith.addf %23, %24 : vector<8x128xf32>
      %26 = math.tanh %25 : vector<8x128xf32>
      %c0_25 = arith.constant 0 : index
      %c0_26 = arith.constant 0 : index
      %27 = vector.load %arg11[%c0_25, %c0_26] : memref<128x128xf32, #tpu.memory_space<vmem>>, vector<128x128xf32>
      %c0_27 = arith.constant 0 : index
      %c0_28 = arith.constant 0 : index
      %28 = vector.load %arg12[%c0_27, %c0_28] : memref<1x128xf32, #tpu.memory_space<vmem>>, vector<1x128xf32>
      %cst_29 = arith.constant dense<0.000000e+00> : vector<8x128xf32>
      %29 = tpu.matmul %26, %27, %cst_29 {dimension_numbers = #tpu.dot_dimension_numbers<[1], [0], [0], [1], [0, 0, 1, 1], [], []>} : vector<8x128xf32>, vector<128x128xf32>, vector<8x128xf32> -> vector<8x128xf32>
      %30 = vector.broadcast %28 : vector<1x128xf32> to vector<8x128xf32>
      %31 = arith.addf %29, %30 : vector<8x128xf32>
      %32 = math.tanh %31 : vector<8x128xf32>
      %33 = arith.mulf %19, %32 : vector<8x128xf32>
      %c0_30 = arith.constant 0 : index
      %c0_31 = arith.constant 0 : index
      %34 = vector.load %arg14[%c0_30, %c0_31] : memref<8x128xf32, #tpu.memory_space<vmem>>, vector<8x128xf32>
      tpu.vector_store %arg14[%c0_30, %c0_31], %33 {strides = array<i32>} : memref<8x128xf32, #tpu.memory_space<vmem>>, vector<8x128xf32>,
    } else {
    }
    %c0 = arith.constant 0 : index
    %c0_1 = arith.constant 0 : index
    %3 = vector.load %arg14[%c0, %c0_1] : memref<8x128xf32, #tpu.memory_space<vmem>>, vector<8x128xf32>
    %c0_2 = arith.constant 0 : index
    %c0_3 = arith.constant 0 : index
    %4 = vector.load %arg4[%c0_2, %c0_3] : memref<128x128xf32, #tpu.memory_space<vmem>>, vector<128x128xf32>
    %cst = arith.constant dense<0.000000e+00> : vector<8x128xf32>
    %5 = tpu.matmul %3, %4, %cst {dimension_numbers = #tpu.dot_dimension_numbers<[1], [1], [0], [0], [0, 0, 1, 0], [], []>} : vector<8x128xf32>, vector<128x128xf32>, vector<8x128xf32> -> vector<8x128xf32>
    %c0_4 = arith.constant 0 : index
    %c0_5 = arith.constant 0 : index
    %6 = vector.load %arg13[%c0_4, %c0_5] : memref<8x128xf32, #tpu.memory_space<vmem>>, vector<8x128xf32>
    tpu.vector_store %arg13[%c0_4, %c0_5], %5 {strides = array<i32>} : memref<8x128xf32, #tpu.memory_space<vmem>>, vector<8x128xf32>,
    return
  }
  func.func @transform_0(%arg0: i32, %arg1: i32) -> (i32, i32) {
    %c0_i32 = arith.constant 0 : i32
    %c0_i32_0 = arith.constant 0 : i32
    return %arg0, %c0_i32 : i32, i32
  }
  func.func @transform_1(%arg0: i32, %arg1: i32) -> (i32, i32) {
    %c0_i32 = arith.constant 0 : i32
    %c0_i32_0 = arith.constant 0 : i32
    return %arg0, %c0_i32 : i32, i32
  }
  func.func @transform_2(%arg0: i32, %arg1: i32) -> (i32, i32) {
    %c0_i32 = arith.constant 0 : i32
    %c0_i32_0 = arith.constant 0 : i32
    return %arg1, %c0_i32 : i32, i32
  }
  func.func @transform_3(%arg0: i32, %arg1: i32) -> (i32, i32) {
    %c0_i32 = arith.constant 0 : i32
    %c0_i32_0 = arith.constant 0 : i32
    %c0_i32_1 = arith.constant 0 : i32
    return %c0_i32, %c0_i32_0 : i32, i32
  }
  func.func @transform_4(%arg0: i32, %arg1: i32) -> (i32, i32) {
    %c0_i32 = arith.constant 0 : i32
    %c0_i32_0 = arith.constant 0 : i32
    %c0_i32_1 = arith.constant 0 : i32
    return %c0_i32, %c0_i32_0 : i32, i32
  }
  func.func @transform_5(%arg0: i32, %arg1: i32) -> (i32, i32) {
    %c0_i32 = arith.constant 0 : i32
    %c0_i32_0 = arith.constant 0 : i32
    %c0_i32_1 = arith.constant 0 : i32
    return %c0_i32, %c0_i32_0 : i32, i32
  }
  func.func @transform_6(%arg0: i32, %arg1: i32) -> (i32, i32) {
    %c0_i32 = arith.constant 0 : i32
    %c0_i32_0 = arith.constant 0 : i32
    %c0_i32_1 = arith.constant 0 : i32
    return %c0_i32, %c0_i32_0 : i32, i32
  }
  func.func @transform_7(%arg0: i32, %arg1: i32) -> (i32, i32) {
    %c0_i32 = arith.constant 0 : i32
    %c0_i32_0 = arith.constant 0 : i32
    %c0_i32_1 = arith.constant 0 : i32
    return %c0_i32, %c0_i32_0 : i32, i32
  }
  func.func @transform_8(%arg0: i32, %arg1: i32) -> (i32, i32) {
    %c0_i32 = arith.constant 0 : i32
    %c0_i32_0 = arith.constant 0 : i32
    %c0_i32_1 = arith.constant 0 : i32
    return %c0_i32, %c0_i32_0 : i32, i32
  }
  func.func @transform_9(%arg0: i32, %arg1: i32) -> (i32, i32) {
    %c0_i32 = arith.constant 0 : i32
    %c0_i32_0 = arith.constant 0 : i32
    %c0_i32_1 = arith.constant 0 : i32
    return %c0_i32, %c0_i32_0 : i32, i32
  }
  func.func @transform_10(%arg0: i32, %arg1: i32) -> (i32, i32) {
    %c0_i32 = arith.constant 0 : i32
    %c0_i32_0 = arith.constant 0 : i32
    %c0_i32_1 = arith.constant 0 : i32
    return %c0_i32, %c0_i32_0 : i32, i32
  }
  func.func @transform_11(%arg0: i32, %arg1: i32) -> (i32, i32) {
    %c0_i32 = arith.constant 0 : i32
    return %arg0, %arg1 : i32, i32
  }
}

</mosaic_0001>

<bundles_post_ra>
// kernel: opnn_forward.3
= control target key start
LH: loop header
LB: loop body
LE: loop exit
PB: predicated region body
PF: predicated region fallthrough
CT: control target
= control target key end

     0   :  { %v800_v2 = vmov 0.0|0.0   ;;  %vm801_vm0 = vmmov 0   ;;  %v802_v4 = vmov 0.0   ;;  %vm53_vm1 = vcmask 130048   ;;  %s1088_s0 = inlined_call_operand.vmem [shape: f32[8,16], index: 0, kind: input, shape index: {}]   ;;  %s1089_s1 = inlined_call_operand.vmem [shape: f32[8,16], index: 1, kind: input, shape index: {}]   ;;  %s1090_s2 = inlined_call_operand.vmem [shape: f32[128,128], index: 2, kind: input, shape index: {}]   ;;  %s1091_s3 = inlined_call_operand.vmem [shape: f32[16,128], index: 3, kind: input, shape index: {}]   ;;  %s1092_s4 = inlined_call_operand.vmem [shape: f32[1,128], index: 4, kind: input, shape index: {}]   ;;  %s1093_s5 = inlined_call_operand.vmem [shape: f32[128,128], index: 5, kind: input, shape index: {}]   ;;  %s1094_s6 = inlined_call_operand.vmem [shape: f32[1,128], index: 6, kind: input, shape index: {}]   ;;  %s1095_s7 = inlined_call_operand.vmem [shape: f32[16,128], index: 7, kind: input, shape index: {}]   ;;  %s1096_s8 = inlined_call_operand.vmem [shape: f32[1,128], index: 8, kind: input, shape index: {}]   ;;  %s1097_s9 = inlined_call_operand.vmem [shape: f32[128,128], index: 9, kind: input, shape index: {}]   ;;  %s1098_s10 = inlined_call_operand.vmem [shape: f32[1,128], index: 10, kind: input, shape index: {}]   ;;  %s1099_s11 = inlined_call_operand.hbm [shape: f32[8,128], index: 11, kind: output, shape index: {}]  }
   0x1   :  { %v44_v0 = vld [vmem:[%s1091_s3] sm:$0xff]  ;;  %v45_v1 = vld [vmem:[%s1091_s3 + $0x8] sm:$0xff]  ;;  %686 = vmatprep.subr.bf16.mxu1 %v800_v2  ;;  %571 = vmatprep.mubr.msk.f32.mxu1 %vm801_vm0, %v802_v4  ;;  %v130_v7 = vld [vmem:[%s1093_s5 + $0x10] sm:$0xff] }
   0x2   :  { %v687_v3 = vpack.c.bf16 %v45_v1, %v44_v0  ;;  %v128_v5 = vld [vmem:[%s1093_s5] sm:$0xff]  ;;  %v129_v6 = vld [vmem:[%s1093_s5 + $0x8] sm:$0xff]  ;;  %689 = vmatprep.subr.bf16.mxu0 %v800_v2  ;;  %v131_v9 = vld [vmem:[%s1093_s5 + $0x18] sm:$0xff]  ;;  %606 = vmatprep.mubr.msk.f32.mxu0 %vm801_vm0, %v802_v4 }
   0x3   :  { %v690_v8 = vpack.c.bf16 %v129_v6, %v128_v5  ;;  %v43_v10 = vld [vmem:[%s1088_s0] sm:$0xff]  ;;  %v693_v11 = vpack.c.bf16 %v131_v9, %v130_v7 }
   0x4   :  { %688 = vmatpush3.bf16.msra.mxu1 %v687_v3 }
   0x5   :  { %691 = vmatpush3.bf16.msra.mxu0 %v690_v8  ;;  %740 = vmatprep.subr.bf16.mxu1 %v800_v2 }
   0x6   :  { %16 = vsyncpa [#allocation4], 0  ;;  %692 = vmatprep.subr.bf16.mxu0 %v800_v2  ;;  %v132_v12 = vld [vmem:[%s1093_s5 + $0x20] sm:$0xff]  ;;  %v133_v13 = vld [vmem:[%s1093_s5 + $0x28] sm:$0xff] }
   0x7   :  { %572 = vmatmul.mubr.msk.f32.vlgmr.msra.gmra.mrb[0].mxu1 %vm53_vm1, %v43_v10  ;;  %v696_v14 = vpack.c.bf16 %v133_v13, %v132_v12  ;;  %v134_v15 = vld [vmem:[%s1093_s5 + $0x30] sm:$0xff]  ;;  %v135_v16 = vld [vmem:[%s1093_s5 + $0x38] sm:$0xff]  ;;  %v136_v18 = vld [vmem:[%s1093_s5 + $0x40] sm:$0xff] }
   0x8   :  { %683 = vmatprep.mubr.msk.f32.mxu1 %vm801_vm0, %v802_v4  ;;  %v699_v17 = vpack.c.bf16 %v135_v16, %v134_v15  ;;  %v137_v19 = vld [vmem:[%s1093_s5 + $0x48] sm:$0xff]  ;;  %v138_v21 = vld [vmem:[%s1093_s5 + $0x50] sm:$0xff]  ;;  %v139_v22 = vld [vmem:[%s1093_s5 + $0x58] sm:$0xff] }
   0x9   :  { %694 = vmatpush3.bf16.msra.mxu0 %v693_v11  ;;  %v702_v20 = vpack.c.bf16 %v137_v19, %v136_v18  ;;  %v705_v23 = vpack.c.bf16 %v139_v22, %v138_v21  ;;  %v140_v24 = vld [vmem:[%s1093_s5 + $0x60] sm:$0xff]  ;;  %v141_v25 = vld [vmem:[%s1093_s5 + $0x68] sm:$0xff]  ;;  %v142_v27 = vld [vmem:[%s1093_s5 + $0x70] sm:$0xff] }
   0xa   :  { %695 = vmatprep.subr.bf16.mxu0 %v800_v2  ;;  %v708_v26 = vpack.c.bf16 %v141_v25, %v140_v24  ;;  %v143_v28 = vld [vmem:[%s1093_s5 + $0x78] sm:$0xff]  ;;  %v504_v30 = vld [vmem:[%s1092_s4] ss:$0 sm:$0xff]  ;;  %v224_v35 = vld [vmem:[%s1095_s7 + $0x8] sm:$0xff] }
   0xb   :  { %v711_v29 = vpack.c.bf16 %v143_v28, %v142_v27  ;;  %v223_v34 = vld [vmem:[%s1095_s7] sm:$0xff]  ;;  %v307_v38 = vld [vmem:[%s1097_s9 + $0x8] sm:$0xff]  ;;  %v308_v42 = vld [vmem:[%s1097_s9 + $0x10] sm:$0xff] }
   0xc   :  { %v714_v36 = vpack.c.bf16 %v224_v35, %v223_v34  ;;  %v306_v37 = vld [vmem:[%s1097_s9] sm:$0xff]  ;;  %v309_v43 = vld [vmem:[%s1097_s9 + $0x18] sm:$0xff]  ;;  %v311_v46 = vld [vmem:[%s1097_s9 + $0x28] sm:$0xff] }
   0xd   :  { %697 = vmatpush3.bf16.msra.mxu0 %v696_v14  ;;  %v222_v40 = vld [vmem:[%s1089_s1] sm:$0xff]  ;;  %v717_v41 = vpack.c.bf16 %v307_v38, %v306_v37  ;;  %v720_v44 = vpack.c.bf16 %v309_v43, %v308_v42  ;;  %v312_v48 = vld [vmem:[%s1097_s9 + $0x30] sm:$0xff]  ;;  %v313_v49 = vld [vmem:[%s1097_s9 + $0x38] sm:$0xff] }
   0xe   :  { %698 = vmatprep.subr.bf16.mxu0 %v800_v2  ;;  %v310_v45 = vld [vmem:[%s1097_s9 + $0x20] sm:$0xff]  ;;  %v726_v50 = vpack.c.bf16 %v313_v49, %v312_v48  ;;  %v315_v52 = vld [vmem:[%s1097_s9 + $0x48] sm:$0xff]  ;;  %v316_v54 = vld [vmem:[%s1097_s9 + $0x50] sm:$0xff] }
   0xf   :  { %v723_v47 = vpack.c.bf16 %v311_v46, %v310_v45  ;;  %v314_v51 = vld [vmem:[%s1097_s9 + $0x40] sm:$0xff]  ;;  %v317_v55 = vld [vmem:[%s1097_s9 + $0x58] sm:$0xff]  ;;  %v319_v58 = vld [vmem:[%s1097_s9 + $0x68] sm:$0xff] }
  0x10   :  { %v729_v53 = vpack.c.bf16 %v315_v52, %v314_v51  ;;  %v732_v56 = vpack.c.bf16 %v317_v55, %v316_v54  ;;  %v318_v57 = vld [vmem:[%s1097_s9 + $0x60] sm:$0xff]  ;;  %v320_v60 = vld [vmem:[%s1097_s9 + $0x70] sm:$0xff]  ;;  %v321_v61 = vld [vmem:[%s1097_s9 + $0x78] sm:$0xff] }
  0x11   :  { %700 = vmatpush3.bf16.msra.mxu0 %v699_v17  ;;  %v735_v59 = vpack.c.bf16 %v319_v58, %v318_v57  ;;  %v738_v62 = vpack.c.bf16 %v321_v61, %v320_v60  ;;  %v403_v63 = vld [vmem:[%s1090_s2] sm:$0xff]  ;;  %v404_v0 = vld [vmem:[%s1090_s2 + $0x8] sm:$0xff]  ;;  %v405_v3 = vld [vmem:[%s1090_s2 + $0x10] sm:$0xff] }
  0x12   :  { %701 = vmatprep.subr.bf16.mxu0 %v800_v2  ;;  %v741_v1 = vpack.c.bf16 %v404_v0, %v403_v63  ;;  %v407_v6 = vld [vmem:[%s1090_s2 + $0x20] sm:$0xff]  ;;  %v408_v7 = vld [vmem:[%s1090_s2 + $0x28] sm:$0xff]  ;;  %v409_v9 = vld [vmem:[%s1090_s2 + $0x30] sm:$0xff] }
  0x13   :  { %v747_v8 = vpack.c.bf16 %v408_v7, %v407_v6  ;;  %v410_v10 = vld [vmem:[%s1090_s2 + $0x38] sm:$0xff]  ;;  %v411_v12 = vld [vmem:[%s1090_s2 + $0x40] sm:$0xff]  ;;  %v412_v13 = vld [vmem:[%s1090_s2 + $0x48] sm:$0xff] }
  0x14   :  { %742 = vmatpush3.bf16.xpose.msra.mxu1 %v741_v1  ;;  %v750_v11 = vpack.c.bf16 %v410_v10, %v409_v9  ;;  %v753_v14 = vpack.c.bf16 %v412_v13, %v411_v12  ;;  %v413_v15 = vld [vmem:[%s1090_s2 + $0x50] sm:$0xff]  ;;  %v414_v16 = vld [vmem:[%s1090_s2 + $0x58] sm:$0xff]  ;;  %v415_v25 = vld [vmem:[%s1090_s2 + $0x60] sm:$0xff] }
  0x15   :  { %703 = vmatpush3.bf16.msra.mxu0 %v702_v20  ;;  %743 = vmatprep.subr.bf16.mxu1 %v800_v2  ;;  %v756_v17 = vpack.c.bf16 %v414_v16, %v413_v15  ;;  %v507_v20 = vld [vmem:[%s1096_s8] ss:$0 sm:$0xff]  ;;  %v417_v28 = vld [vmem:[%s1090_s2 + $0x70] sm:$0xff] }
  0x16   :  { %704 = vmatprep.subr.bf16.mxu0 %v800_v2 }
  0x19   :  { %706 = vmatpush3.bf16.msra.mxu0 %v705_v23 }
  0x1a   :  { %707 = vmatprep.subr.bf16.mxu0 %v800_v2 }
  0x1d   :  { %709 = vmatpush3.bf16.msra.mxu0 %v708_v26  ;;  %v416_v26 = vld [vmem:[%s1090_s2 + $0x68] sm:$0xff] }
  0x1e   :  { %710 = vmatprep.subr.bf16.mxu0 %v800_v2  ;;  %v759_v27 = vpack.c.bf16 %v416_v26, %v415_v25 }
  0x21   :  { %712 = vmatpush3.bf16.msra.mxu0 %v711_v29  ;;  %v418_v29 = vld [vmem:[%s1090_s2 + $0x78] sm:$0xff] }
  0x22   :  { %713 = vmatprep.subr.bf16.mxu0 %v800_v2 }
  0xda   :  { %v123_v31 = vpop.f32.mrb[0].mxu1 }
  0xdb   :  { %v124_v32 = vadd.f32 %v504_v30, %v123_v31  ;;  %v573_v33 = vpop.f32.mrb[1].mxu1  ;;  %v762_v30 = vpack.c.bf16 %v418_v29, %v417_v28  ;;  %v506_v31 = vld [vmem:[%s1094_s6] ss:$0 sm:$0xff] }
  0xdc   :  { %v509_v33 = vld [vmem:[%s1098_s10] ss:$0 sm:$0xff] }
  0xdd   :  { %768 = vtanh.f32 %v124_v32 }
  0xe7   :  { %v769_v39 = vpop.eup %768 }
  0xe8   :  { %607 = vmatmul.mubr.f32.vlgmr.msra.gmra.mrb[0].mxu0 %v769_v39 }
  0xe9   :  { %715 = vmatpush3.bf16.msra.mxu0 %v714_v36  ;;  %613 = vmatprep.mubr.msk.f32.mxu0 %vm801_vm0, %v802_v4 }
  0xea   :  { %716 = vmatprep.subr.bf16.mxu0 %v800_v2 }
  0xec   :  { %614 = vmatmul.mubr.msk.f32.vlgmr.msra.gmra.mrb[2].mxu0 %vm53_vm1, %v222_v40 }
  0xed   :  { %718 = vmatpush3.bf16.msra.mxu0 %v717_v41  ;;  %648 = vmatprep.mubr.msk.f32.mxu0 %vm801_vm0, %v802_v4  ;;  %v406_v4 = vld [vmem:[%s1090_s2 + $0x18] sm:$0xff]  ;;  %s803_s2 = smov [#allocation3]  }
  0xee   :  { %719 = vmatprep.subr.bf16.mxu0 %v800_v2  ;;  %v744_v5 = vpack.c.bf16 %v406_v4, %v405_v3  ;;  %s496_s14 = sshll.u32 %s803_s2, 4  ;;  %s497_s14 = int_to_ptr.vmem [resolvable:$true] %s496_s14 }
  0xef   :  { %s776_s6 = scalar_lea.vmem %s497_s14, 128  ;;  %p781_p1 = scmp.lt.s32.totalorder %s497_s14, %s497_s14 }
  0xf0   :  { %745 = vmatpush3.bf16.xpose.msra.mxu1 %v744_v5  ;;  %p777_p0 = scmp.ne.s32.totalorder %s497_s14, %s776_s6  ;;  %p782_p2 = scmp.lt.s32.totalorder %s776_s6, %s776_s6 }
  0xf1   :  { %721 = vmatpush3.bf16.msra.mxu0 %v720_v44  ;;  %746 = vmatprep.subr.bf16.mxu1 %v800_v2 }
  0xf2   :  { %722 = vmatprep.subr.bf16.mxu0 %v800_v2  ;;  %p783_p3 = por %p782_p2, %p781_p1 }
  0xf4   :  { %p784_p4 = pnand %p783_p3, %p777_p0 }
  0xf5   :  { %724 = vmatpush3.bf16.msra.mxu0 %v723_v47 }
  0xf6   :  { %725 = vmatprep.subr.bf16.mxu0 %v800_v2 }
  0xf8   :  { %748 = vmatpush3.bf16.xpose.msra.mxu1 %v747_v8 }
  0xf9   :  { %727 = vmatpush3.bf16.msra.mxu0 %v726_v50  ;;  %749 = vmatprep.subr.bf16.mxu1 %v800_v2 }
  0xfa   :  { %728 = vmatprep.subr.bf16.mxu0 %v800_v2 }
  0xfd   :  { %730 = vmatpush3.bf16.msra.mxu0 %v729_v53 }
  0xfe   :  { %731 = vmatprep.subr.bf16.mxu0 %v800_v2 }
 0x100   :  { %751 = vmatpush3.bf16.xpose.msra.mxu1 %v750_v11 }
 0x101   :  { %733 = vmatpush3.bf16.msra.mxu0 %v732_v56  ;;  %752 = vmatprep.subr.bf16.mxu1 %v800_v2 }
 0x102   :  { %734 = vmatprep.subr.bf16.mxu0 %v800_v2 }
 0x105   :  { %736 = vmatpush3.bf16.msra.mxu0 %v735_v59 }
 0x106   :  { %737 = vmatprep.subr.bf16.mxu0 %v800_v2 }
 0x108   :  { %754 = vmatpush3.bf16.xpose.msra.mxu1 %v753_v14 }
 0x109   :  { %739 = vmatpush3.bf16.msra.mxu0 %v738_v62  ;;  %755 = vmatprep.subr.bf16.mxu1 %v800_v2 }
 0x110   :  { %757 = vmatpush3.bf16.xpose.msra.mxu1 %v756_v17 }
 0x111   :  { %758 = vmatprep.subr.bf16.mxu1 %v800_v2 }
 0x118   :  { %760 = vmatpush3.bf16.xpose.msra.mxu1 %v759_v27 }
 0x119   :  { %761 = vmatprep.subr.bf16.mxu1 %v800_v2 }
 0x120   :  { %763 = vmatpush3.bf16.xpose.msra.mxu1 %v762_v30 }
 0x1bb   :  { %v217_v18 = vpop.f32.mrb[0].mxu0 }
 0x1bc   :  { %v608_v19 = vpop.f32.mrb[1].mxu0  ;;  %v218_v32 = vadd.f32 %v506_v31, %v217_v18 }
 0x1bf   :  { %v301_v21 = vpop.f32.mrb[2].mxu0 }
 0x1c0   :  { %v302_v22 = vadd.f32 %v507_v20, %v301_v21  ;;  %v615_v23 = vpop.f32.mrb[3].mxu0 }
 0x1c2   :  { %770 = vtanh.f32 %v302_v22 }
 0x1c3   :  { %772 = vtanh.f32 %v218_v32 }
 0x1cc   :  { %v771_v24 = vpop.eup %770 }
 0x1cd   :  { %649 = vmatmul.mubr.f32.vlgmr.msra.gmra.mrb[4].mxu0 %v771_v24  ;;  %v773_v36 = vpop.eup %772 }
 0x2a0   :  { %v395_v2 = vpop.f32.mrb[4].mxu0 }
 0x2a1   :  { %v396_v34 = vadd.f32 %v509_v33, %v395_v2  ;;  %v650_v35 = vpop.f32.mrb[5].mxu0 }
 0x2a3   :  { %774 = vtanh.f32 %v396_v34 }
 0x2ad   :  { %v775_v37 = vpop.eup %774 }
 0x2ae   :  { %v400_v38 = vmul.f32 %v775_v37, %v773_v36 }
 0x2b0   :  { %684 = vmatmul.mubr.f32.vlgmr.msra.gmra.mrb[2].mxu1 %v400_v38 }
 0x383   :  { %v485_v39 = vpop.f32.mrb[2].mxu1 }
 0x384   :  { %489 = vst [vmem:[#allocation3] sm:$0xff] %v485_v39  ;;  %v685_v40 = vpop.f32.mrb[3].mxu1 }
 0x385   :  { %787 = shalt.err (!%p784_p4)
}
 0x386   :  { %s788_s15 = scalar_lea.hbm %s1099_s11, 128 }
 0x387   :  { %p789_p5 = scmp.ne.s32.totalorder %s1099_s11, %s788_s15  ;;  %p792_p6 = scmp.lt.u32.totalorder %s788_s15, %s1099_s11 }
 0x389   :  { %p794_p7 = pnand %p792_p6, %p789_p5 }
 0x38b   :  { %797 = shalt.err (!%p794_p7)
}
 0x38c   :  { %499 = dma.vmem_to_hbm [thread:$0]  %s497_s14, 128, %s1099_s11, [#allocation4]  }
 0x38d   :  { %798 = dma.done.wait [#allocation4], 128  }
 0x38e   :  { %799 = vsyncadd [#allocation4], 4294967168 }
 0x38f   :  { %503 = vsyncpa [#allocation4], 1 }

// kernel: opnn_forward.2
= control target key start
LH: loop header
LB: loop body
LE: loop exit
PB: predicated region body
PF: predicated region fallthrough
CT: control target
= control target key end

     0   :  { %vm93_vm0 = vcmask 1041408   ;;  %vm44_vm1 = vcmask 15360   ;;  %s959_s1 = inlined_call_operand.vmem [shape: f32[2,128], index: 1, kind: input, shape index: {}]   ;;  %s960_s0 = inlined_call_operand.vmem [shape: f32[128,2], index: 0, kind: input, shape index: {}]   ;;  %s961_s3 = inlined_call_operand.vmem [shape: f32[128,128], index: 3, kind: input, shape index: {}]   ;;  %s962_s2 = inlined_call_operand.vmem [shape: f32[1,128], index: 2, kind: input, shape index: {}]   ;;  %s963_s4 = inlined_call_operand.vmem [shape: f32[1,128], index: 4, kind: input, shape index: {}]   ;;  %s964_s5 = inlined_call_operand.vmem [shape: f32[128,128], index: 5, kind: output, shape index: {}]  }
   0x1   :  { %v36_v0 = vld [vmem:[%s959_s1] sm:$0x3]  ;;  %v21_v2 = vld [vmem:[%s960_s0 + $0x8] sm:$0xff]  ;;  %v22_v3 = vld [vmem:[%s960_s0 + $0x10] sm:$0xff] }
   0x2   :  { %v20_v1 = vld [vmem:[%s960_s0] sm:$0xff]  ;;  %530 = vmatprep.subr.msk.mxu0 %vm93_vm0, %v36_v0  ;;  %v23_v4 = vld [vmem:[%s960_s0 + $0x18] sm:$0xff]  ;;  %v259_v7 = vld [vmem:[%s961_s3 + $0x8] sm:$0xff] }
   0x3   :  { %532 = vmatprep.mubr.msk.f32.mxu0 %vm44_vm1, %v20_v1  ;;  %531 = vmatpush3.msk.msra.mxu0 %vm93_vm0, %v36_v0  ;;  %v24_v5 = vld [vmem:[%s960_s0 + $0x20] sm:$0xff]  ;;  %v260_v8 = vld [vmem:[%s961_s3 + $0x10] sm:$0xff]  ;;  %v261_v9 = vld [vmem:[%s961_s3 + $0x18] sm:$0xff] }
   0x4   :  { %533 = vmatmul.mubr.msk.f32.vlgmr.msra.gmra.mrb[0].mxu0 %vm44_vm1, %v21_v2  ;;  %v258_v6 = vld [vmem:[%s961_s3] sm:$0xff]  ;;  %v616_v11 = vpack.c.bf16 %v261_v9, %v260_v8  ;;  %v25_v12 = vld [vmem:[%s960_s0 + $0x28] sm:$0xff]  ;;  %v26_v15 = vld [vmem:[%s960_s0 + $0x30] sm:$0xff] }
   0x5   :  { %535 = vmatprep.mubr.msk.f32.mxu0 %vm44_vm1, %v22_v3  ;;  %v612_v10 = vpack.c.bf16 %v259_v7, %v258_v6  ;;  %v262_v13 = vld [vmem:[%s961_s3 + $0x20] sm:$0xff]  ;;  %v263_v14 = vld [vmem:[%s961_s3 + $0x28] sm:$0xff]  ;;  %v27_v17 = vld [vmem:[%s960_s0 + $0x38] sm:$0xff] }
   0x6   :  { %v620_v16 = vpack.c.bf16 %v263_v14, %v262_v13  ;;  %v264_v18 = vld [vmem:[%s961_s3 + $0x30] sm:$0xff]  ;;  %v265_v19 = vld [vmem:[%s961_s3 + $0x38] sm:$0xff]  ;;  %v28_v20 = vld [vmem:[%s960_s0 + $0x40] sm:$0xff] }
   0x7   :  { %613 = vmatprep.subr.bf16.mxu0 %v612_v10  ;;  %644 = vmatprep.subr.bf16.mxu1 %v612_v10  ;;  %v624_v21 = vpack.c.bf16 %v265_v19, %v264_v18  ;;  %v29_v22 = vld [vmem:[%s960_s0 + $0x48] sm:$0xff]  ;;  %v30_v23 = vld [vmem:[%s960_s0 + $0x50] sm:$0xff]  ;;  %v31_v24 = vld [vmem:[%s960_s0 + $0x58] sm:$0xff] }
   0x8   :  { %536 = vmatmul.mubr.msk.f32.gmra.mrb[2].mxu0 %vm44_vm1, %v23_v4  ;;  %652 = vmatpush3.bf16.msra.mxu1 %v612_v10  ;;  %v32_v25 = vld [vmem:[%s960_s0 + $0x60] sm:$0xff]  ;;  %v33_v26 = vld [vmem:[%s960_s0 + $0x68] sm:$0xff]  ;;  %v34_v27 = vld [vmem:[%s960_s0 + $0x70] sm:$0xff] }
   0x9   :  { %538 = vmatprep.mubr.msk.f32.mxu0 %vm44_vm1, %v24_v5  ;;  %615 = vmatpush3.bf16.msra.mxu0 %v612_v10  ;;  %v35_v28 = vld [vmem:[%s960_s0 + $0x78] sm:$0xff]  ;;  %v266_v29 = vld [vmem:[%s961_s3 + $0x40] sm:$0xff]  ;;  %v267_v30 = vld [vmem:[%s961_s3 + $0x48] sm:$0xff] }
   0xa   :  { %617 = vmatprep.subr.bf16.mxu0 %v616_v11  ;;  %645 = vmatprep.subr.bf16.mxu1 %v616_v11  ;;  %v628_v31 = vpack.c.bf16 %v267_v30, %v266_v29  ;;  %v268_v32 = vld [vmem:[%s961_s3 + $0x50] sm:$0xff]  ;;  %v269_v33 = vld [vmem:[%s961_s3 + $0x58] sm:$0xff]  ;;  %v270_v35 = vld [vmem:[%s961_s3 + $0x60] sm:$0xff] }
   0xb   :  { %v632_v34 = vpack.c.bf16 %v269_v33, %v268_v32  ;;  %v271_v36 = vld [vmem:[%s961_s3 + $0x68] sm:$0xff]  ;;  %v272_v38 = vld [vmem:[%s961_s3 + $0x70] sm:$0xff]  ;;  %v273_v39 = vld [vmem:[%s961_s3 + $0x78] sm:$0xff] }
   0xc   :  { %539 = vmatmul.mubr.msk.f32.gmra.mrb[4].mxu0 %vm44_vm1, %v25_v12  ;;  %653 = vmatpush3.bf16.msra.mxu1 %v616_v11  ;;  %v636_v37 = vpack.c.bf16 %v271_v36, %v270_v35  ;;  %v640_v40 = vpack.c.bf16 %v273_v39, %v272_v38  ;;  %v872_v41 = vld [vmem:[%s962_s2] ss:$0 sm:$0xff] }
   0xd   :  { %541 = vmatprep.mubr.msk.f32.mxu0 %vm44_vm1, %v26_v15  ;;  %619 = vmatpush3.bf16.msra.mxu0 %v616_v11 }
   0xe   :  { %621 = vmatprep.subr.bf16.mxu0 %v620_v16  ;;  %646 = vmatprep.subr.bf16.mxu1 %v620_v16 }
  0x10   :  { %542 = vmatmul.mubr.msk.f32.gmra.mrb[6].mxu0 %vm44_vm1, %v27_v17  ;;  %654 = vmatpush3.bf16.msra.mxu1 %v620_v16 }
  0x11   :  { %544 = vmatprep.mubr.msk.f32.mxu0 %vm44_vm1, %v28_v20  ;;  %623 = vmatpush3.bf16.msra.mxu0 %v620_v16 }
  0x12   :  { %625 = vmatprep.subr.bf16.mxu0 %v624_v21  ;;  %647 = vmatprep.subr.bf16.mxu1 %v624_v21 }
  0x14   :  { %545 = vmatmul.mubr.msk.f32.gmra.mrb[8].mxu0 %vm44_vm1, %v29_v22  ;;  %655 = vmatpush3.bf16.msra.mxu1 %v624_v21 }
  0x15   :  { %547 = vmatprep.mubr.msk.f32.mxu0 %vm44_vm1, %v30_v23  ;;  %627 = vmatpush3.bf16.msra.mxu0 %v624_v21 }
  0x16   :  { %629 = vmatprep.subr.bf16.mxu0 %v628_v31  ;;  %648 = vmatprep.subr.bf16.mxu1 %v628_v31 }
  0x18   :  { %548 = vmatmul.mubr.msk.f32.gmra.mrb[10].mxu0 %vm44_vm1, %v31_v24  ;;  %656 = vmatpush3.bf16.msra.mxu1 %v628_v31 }
  0x19   :  { %550 = vmatprep.mubr.msk.f32.mxu0 %vm44_vm1, %v32_v25  ;;  %631 = vmatpush3.bf16.msra.mxu0 %v628_v31 }
  0x1a   :  { %633 = vmatprep.subr.bf16.mxu0 %v632_v34  ;;  %649 = vmatprep.subr.bf16.mxu1 %v632_v34 }
  0x1c   :  { %551 = vmatmul.mubr.msk.f32.gmra.mrb[12].mxu0 %vm44_vm1, %v33_v26  ;;  %657 = vmatpush3.bf16.msra.mxu1 %v632_v34  ;;  %v893_v26 = vld [vmem:[%s963_s4] ss:$0 sm:$0xff] }
  0x1d   :  { %553 = vmatprep.mubr.msk.f32.mxu0 %vm44_vm1, %v34_v27  ;;  %635 = vmatpush3.bf16.msra.mxu0 %v632_v34 }
  0x1e   :  { %637 = vmatprep.subr.bf16.mxu0 %v636_v37  ;;  %650 = vmatprep.subr.bf16.mxu1 %v636_v37 }
  0x20   :  { %554 = vmatmul.mubr.msk.f32.gmra.mrb[14].mxu0 %vm44_vm1, %v35_v28  ;;  %658 = vmatpush3.bf16.msra.mxu1 %v636_v37 }
  0x21   :  { %639 = vmatpush3.bf16.msra.mxu0 %v636_v37  ;;  %651 = vmatprep.subr.bf16.mxu1 %v640_v40 }
  0x22   :  { %641 = vmatprep.subr.bf16.mxu0 %v640_v40 }
  0x24   :  { %659 = vmatpush3.bf16.msra.mxu1 %v640_v40 }
  0x25   :  { %643 = vmatpush3.bf16.msra.mxu0 %v640_v40 }
  0xd7   :  { %v534_v42 = vpop.f32.mrb[0].mxu0 }
  0xd8   :  { %v169_v43 = vadd.f32 %v534_v42, %v872_v41  ;;  %v163_v44 = vpop.f32.mrb[1].mxu0 }
  0xd9   :  { %v164_v45 = vadd.f32 %v872_v41, %v163_v44 }
  0xdb   :  { %660 = vtanh.f32 %v164_v45  ;;  %v537_v46 = vpop.f32.mrb[2].mxu0 }
  0xdc   :  { %662 = vtanh.f32 %v169_v43  ;;  %v179_v47 = vadd.f32 %v537_v46, %v872_v41  ;;  %v173_v48 = vpop.f32.mrb[3].mxu0 }
  0xdd   :  { %v174_v49 = vadd.f32 %v872_v41, %v173_v48 }
  0xdf   :  { %664 = vtanh.f32 %v174_v49  ;;  %v540_v50 = vpop.f32.mrb[4].mxu0 }
  0xe0   :  { %666 = vtanh.f32 %v179_v47  ;;  %v189_v51 = vadd.f32 %v540_v50, %v872_v41  ;;  %v183_v52 = vpop.f32.mrb[5].mxu0 }
  0xe1   :  { %v184_v53 = vadd.f32 %v872_v41, %v183_v52 }
  0xe3   :  { %668 = vtanh.f32 %v184_v53  ;;  %v543_v54 = vpop.f32.mrb[6].mxu0 }
  0xe4   :  { %670 = vtanh.f32 %v189_v51  ;;  %v199_v55 = vadd.f32 %v543_v54, %v872_v41  ;;  %v193_v56 = vpop.f32.mrb[7].mxu0 }
  0xe5   :  { %v661_v57 = vpop.eup %660  ;;  %v194_v58 = vadd.f32 %v872_v41, %v193_v56 }
  0xe6   :  { %v663_v59 = vpop.eup %662  ;;  %588 = vmatprep.mubr.f32.mxu0 %v661_v57 }
  0xe7   :  { %672 = vtanh.f32 %v194_v58  ;;  %v546_v60 = vpop.f32.mrb[8].mxu0  ;;  %589 = vmatmul.mubr.f32.vlgmr.msra.gmra.mrb[16].mxu0 %v663_v59 }
  0xe8   :  { %674 = vtanh.f32 %v199_v55  ;;  %v209_v61 = vadd.f32 %v546_v60, %v872_v41  ;;  %v203_v62 = vpop.f32.mrb[9].mxu0 }
  0xe9   :  { %v665_v63 = vpop.eup %664  ;;  %v204_v0 = vadd.f32 %v872_v41, %v203_v62 }
  0xea   :  { %v667_v1 = vpop.eup %666  ;;  %591 = vmatprep.mubr.f32.mxu0 %v665_v63 }
  0xeb   :  { %676 = vtanh.f32 %v204_v0  ;;  %v549_v2 = vpop.f32.mrb[10].mxu0  ;;  %592 = vmatmul.mubr.f32.gmra.mrb[18].mxu0 %v667_v1 }
  0xec   :  { %678 = vtanh.f32 %v209_v61  ;;  %v219_v3 = vadd.f32 %v549_v2, %v872_v41  ;;  %v213_v4 = vpop.f32.mrb[11].mxu0 }
  0xed   :  { %v669_v5 = vpop.eup %668  ;;  %v214_v6 = vadd.f32 %v872_v41, %v213_v4 }
  0xee   :  { %v671_v7 = vpop.eup %670  ;;  %594 = vmatprep.mubr.f32.mxu0 %v669_v5 }
  0xef   :  { %680 = vtanh.f32 %v214_v6  ;;  %v552_v8 = vpop.f32.mrb[12].mxu0  ;;  %595 = vmatmul.mubr.f32.gmra.mrb[20].mxu0 %v671_v7 }
  0xf0   :  { %682 = vtanh.f32 %v219_v3  ;;  %v229_v9 = vadd.f32 %v552_v8, %v872_v41  ;;  %v223_v10 = vpop.f32.mrb[13].mxu0 }
  0xf1   :  { %v673_v11 = vpop.eup %672  ;;  %v224_v12 = vadd.f32 %v872_v41, %v223_v10 }
  0xf2   :  { %v675_v13 = vpop.eup %674  ;;  %597 = vmatprep.mubr.f32.mxu1 %v673_v11 }
  0xf3   :  { %684 = vtanh.f32 %v224_v12  ;;  %v555_v14 = vpop.f32.mrb[14].mxu0  ;;  %598 = vmatmul.mubr.f32.vlgmr.msra.gmra.mrb[0].mxu1 %v675_v13 }
  0xf4   :  { %686 = vtanh.f32 %v229_v9  ;;  %v239_v15 = vadd.f32 %v555_v14, %v872_v41  ;;  %v233_v16 = vpop.f32.mrb[15].mxu0 }
  0xf5   :  { %v677_v17 = vpop.eup %676  ;;  %v234_v18 = vadd.f32 %v872_v41, %v233_v16 }
  0xf6   :  { %v679_v19 = vpop.eup %678  ;;  %600 = vmatprep.mubr.f32.mxu1 %v677_v17 }
  0xf7   :  { %688 = vtanh.f32 %v234_v18  ;;  %601 = vmatmul.mubr.f32.gmra.mrb[2].mxu1 %v679_v19 }
  0xf8   :  { %690 = vtanh.f32 %v239_v15 }
  0xf9   :  { %v681_v20 = vpop.eup %680 }
  0xfa   :  { %v683_v21 = vpop.eup %682  ;;  %603 = vmatprep.mubr.f32.mxu1 %v681_v20 }
  0xfb   :  { %604 = vmatmul.mubr.f32.gmra.mrb[4].mxu1 %v683_v21 }
  0xfd   :  { %v685_v22 = vpop.eup %684 }
  0xfe   :  { %v687_v23 = vpop.eup %686  ;;  %606 = vmatprep.mubr.f32.mxu1 %v685_v22 }
  0xff   :  { %607 = vmatmul.mubr.f32.gmra.mrb[6].mxu1 %v687_v23 }
 0x101   :  { %v689_v24 = vpop.eup %688 }
 0x102   :  { %v691_v25 = vpop.eup %690  ;;  %609 = vmatprep.mubr.f32.mxu1 %v689_v24 }
 0x103   :  { %610 = vmatmul.mubr.f32.gmra.mrb[8].mxu1 %v691_v25 }
 0x1ba   :  { %v590_v27 = vpop.f32.mrb[16].mxu0 }
 0x1bb   :  { %v353_v28 = vadd.f32 %v590_v27, %v893_v26  ;;  %v347_v29 = vpop.f32.mrb[17].mxu0 }
 0x1bc   :  { %v348_v30 = vadd.f32 %v893_v26, %v347_v29 }
 0x1bd   :  { %692 = vtanh.f32 %v353_v28 }
 0x1be   :  { %694 = vtanh.f32 %v348_v30  ;;  %v593_v31 = vpop.f32.mrb[18].mxu0 }
 0x1bf   :  { %v363_v32 = vadd.f32 %v593_v31, %v893_v26  ;;  %v357_v33 = vpop.f32.mrb[19].mxu0 }
 0x1c0   :  { %v358_v34 = vadd.f32 %v893_v26, %v357_v33 }
 0x1c1   :  { %696 = vtanh.f32 %v363_v32 }
 0x1c2   :  { %698 = vtanh.f32 %v358_v34  ;;  %v596_v35 = vpop.f32.mrb[20].mxu0 }
 0x1c3   :  { %v373_v36 = vadd.f32 %v596_v35, %v893_v26  ;;  %v367_v37 = vpop.f32.mrb[21].mxu0 }
 0x1c4   :  { %v368_v38 = vadd.f32 %v893_v26, %v367_v37 }
 0x1c5   :  { %700 = vtanh.f32 %v373_v36 }
 0x1c6   :  { %702 = vtanh.f32 %v368_v38  ;;  %v599_v39 = vpop.f32.mrb[0].mxu1 }
 0x1c7   :  { %v693_v40 = vpop.eup %692  ;;  %v383_v41 = vadd.f32 %v599_v39, %v893_v26  ;;  %v377_v42 = vpop.f32.mrb[1].mxu1 }
 0x1c8   :  { %v695_v43 = vpop.eup %694  ;;  %443 = vst [vmem:[%s964_s5 + $0x8] sm:$0xff] %v693_v40  ;;  %v378_v44 = vadd.f32 %v893_v26, %v377_v42 }
 0x1c9   :  { %442 = vst [vmem:[%s964_s5] sm:$0xff] %v695_v43  ;;  %704 = vtanh.f32 %v383_v41 }
 0x1ca   :  { %706 = vtanh.f32 %v378_v44  ;;  %v602_v45 = vpop.f32.mrb[2].mxu1 }
 0x1cb   :  { %v697_v46 = vpop.eup %696  ;;  %v393_v47 = vadd.f32 %v602_v45, %v893_v26  ;;  %v387_v48 = vpop.f32.mrb[3].mxu1 }
 0x1cc   :  { %v699_v49 = vpop.eup %698  ;;  %445 = vst [vmem:[%s964_s5 + $0x18] sm:$0xff] %v697_v46  ;;  %v388_v50 = vadd.f32 %v893_v26, %v387_v48 }
 0x1cd   :  { %444 = vst [vmem:[%s964_s5 + $0x10] sm:$0xff] %v699_v49  ;;  %708 = vtanh.f32 %v393_v47 }
 0x1ce   :  { %710 = vtanh.f32 %v388_v50  ;;  %v605_v51 = vpop.f32.mrb[4].mxu1 }
 0x1cf   :  { %v701_v52 = vpop.eup %700  ;;  %v403_v53 = vadd.f32 %v605_v51, %v893_v26  ;;  %v397_v54 = vpop.f32.mrb[5].mxu1 }
 0x1d0   :  { %v703_v55 = vpop.eup %702  ;;  %447 = vst [vmem:[%s964_s5 + $0x28] sm:$0xff] %v701_v52  ;;  %v398_v56 = vadd.f32 %v893_v26, %v397_v54 }
 0x1d1   :  { %446 = vst [vmem:[%s964_s5 + $0x20] sm:$0xff] %v703_v55  ;;  %712 = vtanh.f32 %v403_v53 }
 0x1d2   :  { %714 = vtanh.f32 %v398_v56  ;;  %v608_v57 = vpop.f32.mrb[6].mxu1 }
 0x1d3   :  { %v705_v58 = vpop.eup %704  ;;  %v413_v59 = vadd.f32 %v608_v57, %v893_v26  ;;  %v407_v60 = vpop.f32.mrb[7].mxu1 }
 0x1d4   :  { %v707_v61 = vpop.eup %706  ;;  %449 = vst [vmem:[%s964_s5 + $0x38] sm:$0xff] %v705_v58  ;;  %v408_v62 = vadd.f32 %v893_v26, %v407_v60 }
 0x1d5   :  { %448 = vst [vmem:[%s964_s5 + $0x30] sm:$0xff] %v707_v61  ;;  %716 = vtanh.f32 %v413_v59 }
 0x1d6   :  { %718 = vtanh.f32 %v408_v62  ;;  %v611_v63 = vpop.f32.mrb[8].mxu1 }
 0x1d7   :  { %v709_v0 = vpop.eup %708  ;;  %v423_v1 = vadd.f32 %v611_v63, %v893_v26  ;;  %v417_v2 = vpop.f32.mrb[9].mxu1 }
 0x1d8   :  { %v711_v3 = vpop.eup %710  ;;  %451 = vst [vmem:[%s964_s5 + $0x48] sm:$0xff] %v709_v0  ;;  %v418_v4 = vadd.f32 %v893_v26, %v417_v2 }
 0x1d9   :  { %450 = vst [vmem:[%s964_s5 + $0x40] sm:$0xff] %v711_v3  ;;  %720 = vtanh.f32 %v423_v1 }
 0x1da   :  { %722 = vtanh.f32 %v418_v4 }
 0x1db   :  { %v713_v5 = vpop.eup %712 }
 0x1dc   :  { %v715_v6 = vpop.eup %714  ;;  %453 = vst [vmem:[%s964_s5 + $0x58] sm:$0xff] %v713_v5 }
 0x1dd   :  { %452 = vst [vmem:[%s964_s5 + $0x50] sm:$0xff] %v715_v6 }
 0x1df   :  { %v717_v7 = vpop.eup %716 }
 0x1e0   :  { %v719_v8 = vpop.eup %718  ;;  %455 = vst [vmem:[%s964_s5 + $0x68] sm:$0xff] %v717_v7 }
 0x1e1   :  { %454 = vst [vmem:[%s964_s5 + $0x60] sm:$0xff] %v719_v8 }
 0x1e3   :  { %v721_v9 = vpop.eup %720 }
 0x1e4   :  { %v723_v10 = vpop.eup %722  ;;  %457 = vst [vmem:[%s964_s5 + $0x78] sm:$0xff] %v721_v9 }
 0x1e5   :  { %456 = vst [vmem:[%s964_s5 + $0x70] sm:$0xff] %v723_v10 }

</bundles_post_ra>
